<compile_context>
chip_gen: v6e
topology: v6e:2x2x1
jax: 0.10.0
libtpu: 0.0.40
codegen_flags: <defaults>
</compile_context>

<pallas_src>
import jax
import jax.numpy as jnp
from jax import lax
from jax.experimental import pallas as pl
from jax.experimental.pallas import tpu as pltpu

# ----- module hyperparameters -------------------------------------------------
MLP_LAYER = 2
HIDDEN_SIZE = 32
K = 16

SELU_ALPHA = 1.6732632423543772
SELU_SCALE = 1.0507009873554805


def _selu(x):
    return SELU_SCALE * jnp.where(x > 0, x, SELU_ALPHA * (jnp.exp(x) - 1.0))


# ----- Pallas kernel ----------------------------------------------------------
def sim_attn_kernel(e_ref, d_ref, we1_ref, we2_ref, wd1_ref, wd2_ref,
                    u1_ref, u2_ref, b_ref, out_ref):
    # e_ref: (BT, Le, E), d_ref: (BT, Ld, D) -- one batch tile per grid step.
    bt, le, enc = e_ref.shape
    _, ld, dec = d_ref.shape
    k = u1_ref.shape[0]
    nl = u2_ref.shape[1]

    # Fold the batch tile into the matmul M dimension.
    e2 = e_ref[...].reshape(bt * le, enc)        # (BT*Le, E)
    d2 = d_ref[...].reshape(bt * ld, dec)        # (BT*Ld, D)

    # encoder MLP: SELU(SELU(e @ We1) @ We2)     -> (BT*Le, K)
    h_e = _selu(
        jnp.dot(_selu(jnp.dot(e2, we1_ref[...],
                              preferred_element_type=jnp.float32)),
                we2_ref[...], preferred_element_type=jnp.float32))
    # decoder MLP: SELU(SELU(d @ Wd1) @ Wd2)     -> (BT*Ld, K)
    h_d = _selu(
        jnp.dot(_selu(jnp.dot(d2, wd1_ref[...],
                              preferred_element_type=jnp.float32)),
                wd2_ref[...], preferred_element_type=jnp.float32))

    # Bilinear term: p1t[b, ld, le] = sum_k h_d[b,ld,k] * (h_e @ u1)[b,le,k]
    heu1 = jnp.dot(h_e, u1_ref[...], preferred_element_type=jnp.float32)  # (BT*Le, K)
    h_d_b = h_d.reshape(bt, ld, k)
    heu1_b = heu1.reshape(bt, le, k)
    p1t = jnp.einsum('bmk,bnk->bmn', h_d_b, heu1_b,
                     preferred_element_type=jnp.float32)                  # (BT, Ld, Le)

    # Label projection, kept with Le on the lane axis:
    #   p2t[l, b*Le+le] = sum_k u2[k,l] * h_e[b*Le+le, k]
    p2t = lax.dot_general(u2_ref[...], h_e, (((0,), (1,)), ((), ())),
                          preferred_element_type=jnp.float32)             # (L, BT*Le)
    p2t = p2t.reshape(nl, bt, le)                                         # (L, BT, Le)

    # s[b, l*Ld+ld, le] = p1t[b,ld,le] + p2t[l,b,le] + bias[l]
    # nl is a compile-time constant (1 in the default module) -> static unroll,
    # bias comes from SMEM as a scalar add.
    for l in range(nl):
        s_l = p1t + p2t[l][:, None, :] + b_ref[l]                         # (BT, Ld, Le)
        out_ref[:, l * ld:(l + 1) * ld, :] = s_l


# ----- wrapper ----------------------------------------------------------------
def sim_attn_pallas(e, d, we1, we2, wd1, wd2, u1, u2, b):
    B, Le, E = e.shape
    _, Ld, D = d.shape
    H = we1.shape[1]
    Kk = we2.shape[1]
    L = u2.shape[1]

    b_flat = b.reshape(L)  # (1,1,L) -> (L,) for the SMEM scalar add

    # Two parallel grid steps over batch halves when possible (keeps both v7x
    # TensorCores busy); otherwise fold the whole batch into a single step.
    G = 2 if (B >= 2 and B % 2 == 0) else 1
    BT = B // G

    flops = 2 * B * (Le * E * H + Le * H * Kk + Ld * D * H + Ld * H * Kk
                     + Le * Kk * Kk + Ld * Le * Kk + Le * Kk * L) \
            + 2 * B * Ld * Le * L
    transcendentals = B * (Le * H + Le * Kk + Ld * H + Ld * Kk)
    bytes_accessed = 4 * (B * Le * E + B * Ld * D + E * H + 2 * H * Kk + D * H
                          + Kk * Kk + Kk * L + L + B * L * Ld * Le)

    grid_spec = pltpu.PrefetchScalarGridSpec(
        num_scalar_prefetch=0,
        grid=(G,),
        in_specs=[
            pl.BlockSpec((BT, Le, E), lambda i: (i, 0, 0)),
            pl.BlockSpec((BT, Ld, D), lambda i: (i, 0, 0)),
            pl.BlockSpec((E, H), lambda i: (0, 0)),
            pl.BlockSpec((H, Kk), lambda i: (0, 0)),
            pl.BlockSpec((D, H), lambda i: (0, 0)),
            pl.BlockSpec((H, Kk), lambda i: (0, 0)),
            pl.BlockSpec((Kk, Kk), lambda i: (0, 0)),
            pl.BlockSpec((Kk, L), lambda i: (0, 0)),
            pl.BlockSpec(memory_space=pltpu.MemorySpace.SMEM),  # bias scalars
        ],
        # Lane-dense output slab: (BT, L*Ld, Le); no trailing size-1 lane axis.
        out_specs=pl.BlockSpec((BT, L * Ld, Le), lambda i: (i, 0, 0)),
    )

    out3 = pl.pallas_call(
        sim_attn_kernel,
        out_shape=jax.ShapeDtypeStruct((B, L * Ld, Le), jnp.float32),
        grid_spec=grid_spec,
        compiler_params=pltpu.CompilerParams(
            dimension_semantics=("parallel",),
            vmem_limit_bytes=32 * 1024 * 1024),
        cost_estimate=pl.CostEstimate(flops=flops,
                                      transcendentals=transcendentals,
                                      bytes_accessed=bytes_accessed),
    )(e, d, we1, we2, wd1, wd2, u1, u2, b_flat)

    # (B, L*Ld, Le) -> (B, Ld, Le, L): restore the PyTorch output layout.
    return jnp.transpose(out3.reshape(B, L, Ld, Le), (0, 2, 3, 1))


# ----- pure-JAX reference (mirrors the PyTorch forward) ------------------------
def sim_attn_ref(e, d, we1, we2, wd1, wd2, u1, u2, b):
    h_e = _selu(_selu(e @ we1) @ we2)                       # (B, Le, K)
    h_d = _selu(_selu(d @ wd1) @ wd2)                       # (B, Ld, K)
    part1 = h_e @ u1                                        # (B, Le, K)
    part1 = jnp.einsum('blk,bmk->blm', part1, h_d)          # (B, Le, Ld)
    part1 = jnp.transpose(part1, (0, 2, 1))[..., None]      # (B, Ld, Le, 1)
    part2 = (h_e @ u2)[:, None, :, :]                       # (B, 1, Le, L)
    return part1 + part2 + b                                # (B, Ld, Le, L)


# ----- deterministic parameter init -------------------------------------------
def xavier_normal(key, shape, fan_in, fan_out):
    std = (2.0 / (fan_in + fan_out)) ** 0.5
    return std * jax.random.normal(key, shape, dtype=jnp.float32)


if __name__ == "__main__":
    B, Le, Ld = 2, 8, 8
    ENC, DEC = 16, 16
    H, L = HIDDEN_SIZE, 1

    key = jax.random.PRNGKey(0)
    ks = jax.random.split(key, 10)

    # Linear weights stored as (in_features, out_features) for direct x @ W.
    we1 = xavier_normal(ks[0], (ENC, H), ENC, H)
    we2 = xavier_normal(ks[1], (H, K), H, K)
    wd1 = xavier_normal(ks[2], (DEC, H), DEC, H)
    wd2 = xavier_normal(ks[3], (H, K), H, K)
    u1 = xavier_normal(ks[4], (K, K), K, K)
    u2 = xavier_normal(ks[5], (K, L), K, L)
    bb = xavier_normal(ks[6], (1, 1, L), 1, L)

    e_outputs = jax.random.normal(ks[7], (B, Le, ENC), dtype=jnp.float32)
    d_outputs = jax.random.normal(ks[8], (B, Ld, DEC), dtype=jnp.float32)

    out = sim_attn_pallas(e_outputs, d_outputs, we1, we2, wd1, wd2, u1, u2, bb)
    out = jax.block_until_ready(out)

    ref = sim_attn_ref(e_outputs, d_outputs, we1, we2, wd1, wd2, u1, u2, bb)
    assert out.shape == (B, Ld, Le, L), out.shape
    assert jnp.allclose(out, ref, atol=1e-4, rtol=1e-4), \
        float(jnp.max(jnp.abs(out - ref)))

    print("KERNEL_OK")
</pallas_src>

<mosaic_0001>
module attributes {stable_mosaic.version = 11 : i64} {
  func.func @sim_attn_kernel(%arg0: i32, %arg1: memref<1x8x16xf32, #tpu.memory_space<vmem>>, %arg2: memref<1x8x16xf32, #tpu.memory_space<vmem>>, %arg3: memref<16x32xf32, #tpu.memory_space<vmem>>, %arg4: memref<32x16xf32, #tpu.memory_space<vmem>>, %arg5: memref<16x32xf32, #tpu.memory_space<vmem>>, %arg6: memref<32x16xf32, #tpu.memory_space<vmem>>, %arg7: memref<16x16xf32, #tpu.memory_space<vmem>>, %arg8: memref<16x1xf32, #tpu.memory_space<vmem>>, %arg9: memref<1xf32, #tpu.memory_space<smem>>, %arg10: memref<1x8x8xf32, #tpu.memory_space<vmem>>) attributes {dimension_semantics = [#tpu.dimension_semantics<parallel>], iteration_bounds = array<i64: 2>, scalar_prefetch = 0 : i64, scratch_operands = 0 : i64, tpu.core_type = #tpu.core_type<tc>, window_params = [{transform_indices = @transform_0, window_bounds = array<i64: 1, 8, 16>}, {transform_indices = @transform_1, window_bounds = array<i64: 1, 8, 16>}, {pipeline_mode = #tpu.pipeline_mode<synchronous>, transform_indices = @transform_2, window_bounds = array<i64: 16, 32>}, {pipeline_mode = #tpu.pipeline_mode<synchronous>, transform_indices = @transform_3, window_bounds = array<i64: 32, 16>}, {pipeline_mode = #tpu.pipeline_mode<synchronous>, transform_indices = @transform_4, window_bounds = array<i64: 16, 32>}, {pipeline_mode = #tpu.pipeline_mode<synchronous>, transform_indices = @transform_5, window_bounds = array<i64: 32, 16>}, {pipeline_mode = #tpu.pipeline_mode<synchronous>, transform_indices = @transform_6, window_bounds = array<i64: 16, 16>}, {pipeline_mode = #tpu.pipeline_mode<synchronous>, transform_indices = @transform_7, window_bounds = array<i64: 16, 1>}, {transform_indices = @transform_8, window_bounds = array<i64: 1>}, {transform_indices = @transform_9, window_bounds = array<i64: 1, 8, 8>}]} {
    %c0 = arith.constant 0 : index
    %c0_0 = arith.constant 0 : index
    %c0_1 = arith.constant 0 : index
    %0 = vector.load %arg1[%c0, %c0_0, %c0_1] : memref<1x8x16xf32, #tpu.memory_space<vmem>>, vector<1x8x16xf32>
    %1 = vector.shape_cast %0 : vector<1x8x16xf32> to vector<8x16xf32>
    %c0_2 = arith.constant 0 : index
    %c0_3 = arith.constant 0 : index
    %c0_4 = arith.constant 0 : index
    %2 = vector.load %arg2[%c0_2, %c0_3, %c0_4] : memref<1x8x16xf32, #tpu.memory_space<vmem>>, vector<1x8x16xf32>
    %3 = vector.shape_cast %2 : vector<1x8x16xf32> to vector<8x16xf32>
    %c0_5 = arith.constant 0 : index
    %c0_6 = arith.constant 0 : index
    %4 = vector.load %arg3[%c0_5, %c0_6] : memref<16x32xf32, #tpu.memory_space<vmem>>, vector<16x32xf32>
    %cst = arith.constant dense<0.000000e+00> : vector<8x32xf32>
    %5 = tpu.matmul %1, %4, %cst {dimension_numbers = #tpu.dot_dimension_numbers<[1], [0], [0], [1], [0, 0, 1, 1], [], []>} : vector<8x16xf32>, vector<16x32xf32>, vector<8x32xf32> -> vector<8x32xf32>
    %cst_7 = arith.constant 0.000000e+00 : f32
    %6 = vector.broadcast %cst_7 : f32 to vector<8x32xf32>
    %7 = arith.cmpf ogt, %5, %6 : vector<8x32xf32>
    %8 = math.exp %5 : vector<8x32xf32>
    %cst_8 = arith.constant 1.000000e+00 : f32
    %9 = vector.broadcast %cst_8 : f32 to vector<8x32xf32>
    %10 = arith.subf %8, %9 : vector<8x32xf32>
    %cst_9 = arith.constant 1.67326319 : f32
    %11 = vector.broadcast %cst_9 : f32 to vector<8x32xf32>
    %12 = arith.mulf %11, %10 : vector<8x32xf32>
    %13 = arith.select %7, %5, %12 : vector<8x32xi1>, vector<8x32xf32>
    %cst_10 = arith.constant 1.05070102 : f32
    %14 = vector.broadcast %cst_10 : f32 to vector<8x32xf32>
    %15 = arith.mulf %14, %13 : vector<8x32xf32>
    %c0_11 = arith.constant 0 : index
    %c0_12 = arith.constant 0 : index
    %16 = vector.load %arg4[%c0_11, %c0_12] : memref<32x16xf32, #tpu.memory_space<vmem>>, vector<32x16xf32>
    %cst_13 = arith.constant dense<0.000000e+00> : vector<8x16xf32>
    %17 = tpu.matmul %15, %16, %cst_13 {dimension_numbers = #tpu.dot_dimension_numbers<[1], [0], [0], [1], [0, 0, 1, 1], [], []>} : vector<8x32xf32>, vector<32x16xf32>, vector<8x16xf32> -> vector<8x16xf32>
    %cst_14 = arith.constant 0.000000e+00 : f32
    %18 = vector.broadcast %cst_14 : f32 to vector<8x16xf32>
    %19 = arith.cmpf ogt, %17, %18 : vector<8x16xf32>
    %20 = math.exp %17 : vector<8x16xf32>
    %cst_15 = arith.constant 1.000000e+00 : f32
    %21 = vector.broadcast %cst_15 : f32 to vector<8x16xf32>
    %22 = arith.subf %20, %21 : vector<8x16xf32>
    %cst_16 = arith.constant 1.67326319 : f32
    %23 = vector.broadcast %cst_16 : f32 to vector<8x16xf32>
    %24 = arith.mulf %23, %22 : vector<8x16xf32>
    %25 = arith.select %19, %17, %24 : vector<8x16xi1>, vector<8x16xf32>
    %cst_17 = arith.constant 1.05070102 : f32
    %26 = vector.broadcast %cst_17 : f32 to vector<8x16xf32>
    %27 = arith.mulf %26, %25 : vector<8x16xf32>
    %c0_18 = arith.constant 0 : index
    %c0_19 = arith.constant 0 : index
    %28 = vector.load %arg5[%c0_18, %c0_19] : memref<16x32xf32, #tpu.memory_space<vmem>>, vector<16x32xf32>
    %cst_20 = arith.constant dense<0.000000e+00> : vector<8x32xf32>
    %29 = tpu.matmul %3, %28, %cst_20 {dimension_numbers = #tpu.dot_dimension_numbers<[1], [0], [0], [1], [0, 0, 1, 1], [], []>} : vector<8x16xf32>, vector<16x32xf32>, vector<8x32xf32> -> vector<8x32xf32>
    %cst_21 = arith.constant 0.000000e+00 : f32
    %30 = vector.broadcast %cst_21 : f32 to vector<8x32xf32>
    %31 = arith.cmpf ogt, %29, %30 : vector<8x32xf32>
    %32 = math.exp %29 : vector<8x32xf32>
    %cst_22 = arith.constant 1.000000e+00 : f32
    %33 = vector.broadcast %cst_22 : f32 to vector<8x32xf32>
    %34 = arith.subf %32, %33 : vector<8x32xf32>
    %cst_23 = arith.constant 1.67326319 : f32
    %35 = vector.broadcast %cst_23 : f32 to vector<8x32xf32>
    %36 = arith.mulf %35, %34 : vector<8x32xf32>
    %37 = arith.select %31, %29, %36 : vector<8x32xi1>, vector<8x32xf32>
    %cst_24 = arith.constant 1.05070102 : f32
    %38 = vector.broadcast %cst_24 : f32 to vector<8x32xf32>
    %39 = arith.mulf %38, %37 : vector<8x32xf32>
    %c0_25 = arith.constant 0 : index
    %c0_26 = arith.constant 0 : index
    %40 = vector.load %arg6[%c0_25, %c0_26] : memref<32x16xf32, #tpu.memory_space<vmem>>, vector<32x16xf32>
    %cst_27 = arith.constant dense<0.000000e+00> : vector<8x16xf32>
    %41 = tpu.matmul %39, %40, %cst_27 {dimension_numbers = #tpu.dot_dimension_numbers<[1], [0], [0], [1], [0, 0, 1, 1], [], []>} : vector<8x32xf32>, vector<32x16xf32>, vector<8x16xf32> -> vector<8x16xf32>
    %cst_28 = arith.constant 0.000000e+00 : f32
    %42 = vector.broadcast %cst_28 : f32 to vector<8x16xf32>
    %43 = arith.cmpf ogt, %41, %42 : vector<8x16xf32>
    %44 = math.exp %41 : vector<8x16xf32>
    %cst_29 = arith.constant 1.000000e+00 : f32
    %45 = vector.broadcast %cst_29 : f32 to vector<8x16xf32>
    %46 = arith.subf %44, %45 : vector<8x16xf32>
    %cst_30 = arith.constant 1.67326319 : f32
    %47 = vector.broadcast %cst_30 : f32 to vector<8x16xf32>
    %48 = arith.mulf %47, %46 : vector<8x16xf32>
    %49 = arith.select %43, %41, %48 : vector<8x16xi1>, vector<8x16xf32>
    %cst_31 = arith.constant 1.05070102 : f32
    %50 = vector.broadcast %cst_31 : f32 to vector<8x16xf32>
    %51 = arith.mulf %50, %49 : vector<8x16xf32>
    %c0_32 = arith.constant 0 : index
    %c0_33 = arith.constant 0 : index
    %52 = vector.load %arg7[%c0_32, %c0_33] : memref<16x16xf32, #tpu.memory_space<vmem>>, vector<16x16xf32>
    %cst_34 = arith.constant dense<0.000000e+00> : vector<8x16xf32>
    %53 = tpu.matmul %27, %52, %cst_34 {dimension_numbers = #tpu.dot_dimension_numbers<[1], [0], [0], [1], [0, 0, 1, 1], [], []>} : vector<8x16xf32>, vector<16x16xf32>, vector<8x16xf32> -> vector<8x16xf32>
    %54 = vector.shape_cast %51 : vector<8x16xf32> to vector<1x8x16xf32>
    %55 = vector.shape_cast %53 : vector<8x16xf32> to vector<1x8x16xf32>
    "tpu.trace_start"() <{level = 10 : i32, message = "bmk,bnk->bmn"}> : () -> ()
    %cst_35 = arith.constant dense<0.000000e+00> : vector<1x8x8xf32>
    %56 = tpu.matmul %54, %55, %cst_35 {dimension_numbers = #tpu.dot_dimension_numbers<[2], [2], [1], [1], [0, 0, 0, 1, 1, 1], [0], [0]>} : vector<1x8x16xf32>, vector<1x8x16xf32>, vector<1x8x8xf32> -> vector<1x8x8xf32>
    "tpu.trace_stop"() : () -> ()
    %c0_36 = arith.constant 0 : index
    %c0_37 = arith.constant 0 : index
    %57 = vector.load %arg8[%c0_36, %c0_37] : memref<16x1xf32, #tpu.memory_space<vmem>>, vector<16x1xf32>
    %cst_38 = arith.constant dense<0.000000e+00> : vector<1x8xf32>
    %58 = tpu.matmul %57, %27, %cst_38 {dimension_numbers = #tpu.dot_dimension_numbers<[0], [1], [1], [0], [0, 1, 1, 0], [], []>} : vector<16x1xf32>, vector<8x16xf32>, vector<1x8xf32> -> vector<1x8xf32>
    %59 = vector.shape_cast %58 : vector<1x8xf32> to vector<1x1x8xf32>
    %60 = vector.shape_cast %59 : vector<1x1x8xf32> to vector<1x8xf32>
    %61 = vector.shape_cast %60 : vector<1x8xf32> to vector<1x1x8xf32>
    %62 = vector.broadcast %61 : vector<1x1x8xf32> to vector<1x8x8xf32>
    %63 = arith.addf %56, %62 : vector<1x8x8xf32>
    %c0_39 = arith.constant 0 : index
    %64 = memref.load %arg9[%c0_39] : memref<1xf32, #tpu.memory_space<smem>>
    %65 = vector.broadcast %64 : f32 to vector<1x8x8xf32>
    %66 = arith.addf %63, %65 : vector<1x8x8xf32>
    %c0_40 = arith.constant 0 : index
    %c0_41 = arith.constant 0 : index
    %c0_42 = arith.constant 0 : index
    %67 = vector.load %arg10[%c0_40, %c0_41, %c0_42] : memref<1x8x8xf32, #tpu.memory_space<vmem>>, vector<1x8x8xf32>
    tpu.vector_store %arg10[%c0_40, %c0_41, %c0_42], %66 {strides = array<i32>} : memref<1x8x8xf32, #tpu.memory_space<vmem>>, vector<1x8x8xf32>,
    return
  }
  func.func @transform_0(%arg0: i32) -> (i32, i32, i32) {
    %c0_i32 = arith.constant 0 : i32
    %c0_i32_0 = arith.constant 0 : i32
    %c0_i32_1 = arith.constant 0 : i32
    return %arg0, %c0_i32, %c0_i32_0 : i32, i32, i32
  }
  func.func @transform_1(%arg0: i32) -> (i32, i32, i32) {
    %c0_i32 = arith.constant 0 : i32
    %c0_i32_0 = arith.constant 0 : i32
    %c0_i32_1 = arith.constant 0 : i32
    return %arg0, %c0_i32, %c0_i32_0 : i32, i32, i32
  }
  func.func @transform_2(%arg0: i32) -> (i32, i32) {
    %c0_i32 = arith.constant 0 : i32
    %c0_i32_0 = arith.constant 0 : i32
    %c0_i32_1 = arith.constant 0 : i32
    return %c0_i32, %c0_i32_0 : i32, i32
  }
  func.func @transform_3(%arg0: i32) -> (i32, i32) {
    %c0_i32 = arith.constant 0 : i32
    %c0_i32_0 = arith.constant 0 : i32
    %c0_i32_1 = arith.constant 0 : i32
    return %c0_i32, %c0_i32_0 : i32, i32
  }
  func.func @transform_4(%arg0: i32) -> (i32, i32) {
    %c0_i32 = arith.constant 0 : i32
    %c0_i32_0 = arith.constant 0 : i32
    %c0_i32_1 = arith.constant 0 : i32
    return %c0_i32, %c0_i32_0 : i32, i32
  }
  func.func @transform_5(%arg0: i32) -> (i32, i32) {
    %c0_i32 = arith.constant 0 : i32
    %c0_i32_0 = arith.constant 0 : i32
    %c0_i32_1 = arith.constant 0 : i32
    return %c0_i32, %c0_i32_0 : i32, i32
  }
  func.func @transform_6(%arg0: i32) -> (i32, i32) {
    %c0_i32 = arith.constant 0 : i32
    %c0_i32_0 = arith.constant 0 : i32
    %c0_i32_1 = arith.constant 0 : i32
    return %c0_i32, %c0_i32_0 : i32, i32
  }
  func.func @transform_7(%arg0: i32) -> (i32, i32) {
    %c0_i32 = arith.constant 0 : i32
    %c0_i32_0 = arith.constant 0 : i32
    %c0_i32_1 = arith.constant 0 : i32
    return %c0_i32, %c0_i32_0 : i32, i32
  }
  func.func @transform_8(%arg0: i32) -> i32 {
    %c0_i32 = arith.constant 0 : i32
    %c0_i32_0 = arith.constant 0 : i32
    return %c0_i32 : i32
  }
  func.func @transform_9(%arg0: i32) -> (i32, i32, i32) {
    %c0_i32 = arith.constant 0 : i32
    %c0_i32_0 = arith.constant 0 : i32
    %c0_i32_1 = arith.constant 0 : i32
    return %arg0, %c0_i32, %c0_i32_0 : i32, i32, i32
  }
}

</mosaic_0001>

<bundles_post_ra>
// kernel: tpu_custom_call.1
= control target key start
LH: loop header
LB: loop body
LE: loop exit
PB: predicated region body
PF: predicated region fallthrough
CT: control target
= control target key end

     0   :  { %s1476_s0 = inlined_call_operand.vmem [shape: f32[2,8,16], index: 0, kind: input, shape index: {}]   ;;  %s1477_s1 = inlined_call_operand.vmem [shape: f32[2,8,16], index: 1, kind: input, shape index: {}]   ;;  %s1478_s2 = inlined_call_operand.vmem [shape: f32[16,32], index: 2, kind: input, shape index: {}]   ;;  %s1479_s3 = inlined_call_operand.vmem [shape: f32[32,16], index: 3, kind: input, shape index: {}]   ;;  %s1480_s4 = inlined_call_operand.vmem [shape: f32[16,32], index: 4, kind: input, shape index: {}]   ;;  %s1481_s5 = inlined_call_operand.vmem [shape: f32[32,16], index: 5, kind: input, shape index: {}]   ;;  %s1482_s6 = inlined_call_operand.vmem [shape: f32[16,16], index: 6, kind: input, shape index: {}]   ;;  %s1483_s7 = inlined_call_operand.vmem [shape: f32[16,1], index: 7, kind: input, shape index: {}]   ;;  %s1484_s8 = inlined_call_operand.<no memory space> [shape: f32[1], index: 8, kind: input, shape index: {}]   ;;  %s1485_s9 = inlined_call_operand.hbm [shape: f32[2,8,8], index: 9, kind: output, shape index: {}]  }
   0x1   :  { %14 = sst [smem:[#allocation2]] %s1484_s8 }
   0x2   :  { %15 = vsyncpa [#allocation4], 0 }
   0x3   :  { %17 = vsyncpa [#allocation4 + $0x1], 0  ;;  %s1301_s11 = smov 0   ;;  %s1303_s12 = smov 0  }
   0x4   :  { %s1305_s13 = smov 0   ;;  %s1307_s14 = smov 0  }
   0x5 LB: > { %s1322_s8 = sadd.s32 4294967295, %s1243_s14   ;;  %s1034_s15 = sadd.s32 4294967294, %s1243_s14   ;;  %s1243_s14 = sphi %s1307_s14, %s1491_s14   ;;  %s1239_s13 = sphi %s1305_s13, %s1490_s13   ;;  %s1235_s12 = sphi %s1303_s12, %s1489_s12   ;;  %s1231_s11 = sphi %s1301_s11, %s1488_s11  }
   0x6   : > { %s1326_s16 = sadd.s32 1, %s1243_s14   ;;  %s229_s17 = sadd.s32 1, %s1239_s13 }
   0x7   : > { %s226_s18 = ssub.s32 %s1243_s14, %s1326_s16  ;;  %p239_p0 = scmp.ne.s32.totalorder %s1239_s13, %s1235_s12 }
   0x8   : > { %p227_p1 = scmp.eq.s32.totalorder %s226_s18, 0  ;;  %p240_p2 = scmp.eq.s32.totalorder %s1322_s8, 1 }
   0x9   : > { %p245_p3 = scmp.ne.s32.totalorder %s1235_s12, %s1231_s11  ;;  %p246_p4 = scmp.eq.s32.totalorder %s1034_s15, 1 }
   0xa   : > { %s1337_s19 = scalar_select %p227_p1, %s1239_s13, %s229_s17  }
   0xb   : > { %p1339_p5 = por %p240_p2, %p239_p0  ;;  %p1343_p6 = por %p246_p4, %p245_p3 }
   0xc   : > { %p1037_p7 = scmp.ge.s32.totalorder %s1243_s14, 1  ;;  %p299_p8 = scmp.lt.s32.totalorder %s1243_s14, 3 }
   0xe   : > { %p300_p9 = pnand %p1037_p7, %p299_p8 }
   0xf   : > { %p338_p10 = scmp.lt.s32.totalorder (!%p300_p9), %s1322_s8, 1  ;;  %s335_s23 = sand.u32 (!%p300_p9), 1, %s1235_s12  }
  0x10   : > { %303 = sbr.rel (%p300_p9) target bundleno = 864 (0x360), region = 56  ;;  %s944_s24 = sld [smem:[#allocation2]] (!%p300_p9) }
  0x11   : > { %s1038_s25 = sshll.u32 (!%p300_p9), %s335_s23, 3  ;;  %s950_s15 = scalar_lea.sflag (!%p300_p9), [#allocation4], %s335_s23 }
  0x12   : > { %s1247_s18 = smov (!%p300_p9), [#allocation3]  }
  0x15   : > { %v349_v0 = vld [vmem:[%s1478_s2 + $0x8] sm:$0xff]  ;;  %v1245_v1 = vmov 0.0   ;;  %v348_v2 = vld [vmem:[%s1478_s2] sm:$0xff]  ;;  %vm1246_vm0 = vmmov 0   ;;  %s339_s26 = scalar_select %p338_p10, %s1322_s8, 1  ;;  %vm350_vm1 = vcmask 130048   ;;  %v864_v56 = vlaneseq }
  0x16   : > { %1081 = vmatprep.subr.mxu0 %v1245_v1  ;;  %1085 = vmatprep.mubr.msk.f32.mxu0 %vm1246_vm0, %v1245_v1  ;;  %v517_v3 = vld [vmem:[%s1480_s4 + $0x8] sm:$0xff]  ;;  %v516_v5 = vld [vmem:[%s1480_s4] sm:$0xff]  ;;  %v434_v7 = vld [vmem:[%s1479_s3 + $0x18] sm:$0xff]  ;;  %vm435_vm3 = vcmask 261120   ;;  %v945_v61 = vstv %s944_s24  ;;  %vm947_vm7 = vcmask 64512  }
  0x17   : > { %1082 = vmatpush3.msra.mxu0 %v349_v0  ;;  %1088 = vmatprep.subr.mxu1 %v1245_v1  ;;  %s1039_s27 = sshll.u32 %s339_s26, 3  ;;  %v433_v8 = vld [vmem:[%s1479_s3 + $0x10] sm:$0xff]  ;;  %v432_v9 = vld [vmem:[%s1479_s3 + $0x8] sm:$0xff]  ;;  %v431_v10 = vld [vmem:[%s1479_s3] sm:$0xff]  ;;  %v865_v57 = vshrl.u32 %v864_v56, 7  ;;  %s1055_s26 = sshll.u32 %s1322_s8, 7 }
  0x18   : > { %1083 = vmatprep.subr.mxu0 %v1245_v1  ;;  %1096 = vmatprep.mubr.msk.f32.mxu1 %vm1246_vm0, %v1245_v1  ;;  %s341_s30 = scalar_lea.vmem %s1476_s0, %s1039_s27  ;;  %s345_s17 = scalar_lea.vmem %s1477_s1, %s1039_s27  ;;  %v601_v11 = vld [vmem:[%s1481_s5 + $0x18] sm:$0xff]  ;;  %v600_v12 = vld [vmem:[%s1481_s5 + $0x10] sm:$0xff]  ;;  %v599_v13 = vld [vmem:[%s1481_s5 + $0x8] sm:$0xff] }
  0x19   : > { %1084 = vmatpush3.msra.mxu0 %v348_v2  ;;  %v346_v4 = vld [vmem:[%s341_s30] sm:$0xff]  ;;  %1089 = vmatpush3.msra.mxu1 %v434_v7  ;;  %v683_v31 = vld [vmem:[%s1482_s6 + $0x8] sm:$0xff]  ;;  %v866_v58 = vsub.s32 0, %v865_v57  ;;  %s337_s27 = scalar_lea.vmem [#allocation3], %s1038_s25  ;;  %s961_s10 = scalar_lea.hbm %s1485_s9, %s1055_s26 }
  0x1a   : > { %1099 = vmatprep.subr.mxu0 %v1245_v1  ;;  %1086 = vmatmul.mubr.msk.f32.vlgmr.msra.gmra.mxu0 %vm350_vm1, %v346_v4  ;;  %v347_v6 = vld [vmem:[%s345_s17] sm:$0xff]  ;;  %v758_v34 = vld [vmem:[%s1483_s7 + $0x8] sm:$0xff]  ;;  %s963_s28 = sshll.u32 %s337_s27, 4  ;;  %s1187_s8 = sshll.u32 %s1247_s18, 4  ;;  %s964_s28 = int_to_ptr.vmem [resolvable:$true] %s963_s28  ;;  %s1188_s8 = int_to_ptr.vmem [resolvable:$false] %s1187_s8 }
  0x1b   : > { %1100 = vmatpush3.msra.mxu0 %v517_v3  ;;  %1103 = vmatprep.mubr.msk.f32.mxu0 %vm1246_vm0, %v1245_v1  ;;  %v598_v14 = vld [vmem:[%s1481_s5] sm:$0xff]  ;;  %s1183_s17 = scalar_lea.vmem %s964_s28, 128  ;;  %s1189_s22 = scalar_lea.vmem %s1188_s8, 256 }
  0x1c   : > { %1101 = vmatprep.subr.mxu0 %v1245_v1  ;;  %1090 = vmatprep.subr.mxu1 %v1245_v1  ;;  %v682_v32 = vld [vmem:[%s1482_s6] sm:$0xff]  ;;  %p1184_p11 = scmp.ne.s32.totalorder %s964_s28, %s1183_s17  ;;  %p1190_p0 = scmp.lt.s32.totalorder %s964_s28, %s1188_s8 }
  0x1d   : > { %1102 = vmatpush3.msra.mxu0 %v516_v5  ;;  %1091 = vmatpush3.msra.mxu1 %v433_v8  ;;  %v757_v33 = vld [vmem:[%s1483_s7] sm:$0xff]  ;;  %p1191_p1 = scmp.lt.s32.totalorder %s1189_s22, %s1183_s17 }
  0x1e   : > { %1104 = vmatmul.mubr.msk.f32.vlgmr.msra.gmra.mxu0 %vm350_vm1, %v347_v6  ;;  %1106 = vmatprep.subr.mxu0 %v1245_v1  ;;  %p1185_p12 = pnand %p1184_p11, %p1339_p5 }
  0x1f   : > { %1114 = vmatprep.mubr.msk.f32.mxu0 %vm1246_vm0, %v1245_v1  ;;  %1092 = vmatprep.subr.mxu1 %v1245_v1  ;;  %p1192_p2 = por %p1191_p1, %p1190_p0 }
  0x20   : > { %1093 = vmatpush3.msra.mxu1 %v432_v9  ;;  %1107 = vmatpush3.msra.mxu0 %v601_v11  ;;  %p1186_p13 = pneg %p1185_p12 }
  0x21   : > { %1094 = vmatprep.subr.mxu1 %v1245_v1  ;;  %1108 = vmatprep.subr.mxu0 %v1245_v1 }
  0x22   : > { %1095 = vmatpush3.msra.mxu1 %v431_v10  ;;  %1109 = vmatpush3.msra.mxu0 %v600_v12  ;;  %p1193_p3 = pnand %p1192_p2, %p1186_p13 }
  0x23   : > { %1117 = vmatprep.subr.mxu1 %v1245_v1  ;;  %1110 = vmatprep.subr.mxu0 %v1245_v1 }
  0x24   : > { %1111 = vmatpush3.msra.mxu0 %v599_v13  ;;  %759 = vxpose.xlu0.b32.start [1/2] (short) (narrow) %v757_v33, 8 }
  0x25   : > { %1112 = vmatprep.subr.mxu0 %v1245_v1 }
  0x26   : > { %1113 = vmatpush3.msra.mxu0 %v598_v14 }
  0x27   : > { %1129 = vmatprep.subr.mxu0 %v1245_v1 }
  0x28   : > { %760 = vxpose.xlu0.b32.end [2/2] (short) (narrow) %v758_v34, 8 }
  0xa0   : > { %v775_v45 = vpop.trf.xlu0 }
  0xda   : > { %v420_v15 = vpop.f32.mrf.mxu0 }
  0xdb   : > { %v425_v16 = vmul.f32 1.442695, %v420_v15  ;;  %vm424_vm2 = vcmp.gt.f32.partialorder %v420_v15, 0.0 }
  0xdc   : > { %v1087_v17 = vpop.f32.mrf.mxu0 }
  0xdd   : > { %1175 = vpow2.f32 %v425_v16 }
  0xde   : > { %v587_v18 = vpop.f32.mrf.mxu0 }
  0xdf   : > { %v592_v19 = vmul.f32 1.442695, %v587_v18  ;;  %vm591_vm4 = vcmp.gt.f32.partialorder %v587_v18, 0.0 }
  0xe0   : > { %v1105_v20 = vpop.f32.mrf.mxu0 }
  0xe1   : > { %1177 = vpow2.f32 %v592_v19 }
  0xea   : > { %v1176_v21 = vpop.eup %1175 }
  0xeb   : > { %v1042_v22 = vadd.f32 -1.0, %v1176_v21 }
  0xed   : > { %v428_v23 = vmul.f32 1.6732632, %v1042_v22 }
  0xee   : > { %v1178_v24 = vpop.eup %1177 }
  0xef   : > { %v429_v25 = vsel %vm424_vm2, %v420_v15, %v428_v23  ;;  %v1046_v26 = vadd.f32 -1.0, %v1178_v24 }
  0xf0   : > { %v430_v27 = vmul.f32 1.050701, %v429_v25 }
  0xf1   : > { %v595_v28 = vmul.f32 1.6732632, %v1046_v26 }
  0xf2   : > { %1097 = vmatmul.mubr.msk.f32.vlgmr.msra.gmra.mxu1 %vm435_vm3, %v430_v27 }
  0xf3   : > { %v596_v29 = vsel %vm591_vm4, %v587_v18, %v595_v28  ;;  %1121 = vmatprep.mubr.msk.f32.mxu1 %vm1246_vm0, %v1245_v1  ;;  %1118 = vmatpush3.msra.mxu1 %v683_v31 }
  0xf4   : > { %v597_v30 = vmul.f32 1.050701, %v596_v29  ;;  %1119 = vmatprep.subr.mxu1 %v1245_v1 }
  0xf5   : > { %1120 = vmatpush3.msra.mxu1 %v682_v32 }
  0xf6   : > { %1115 = vmatmul.mubr.msk.f32.vlgmr.msra.gmra.mxu0 %vm435_vm3, %v597_v30  ;;  %1124 = vmatprep.subr.mxu1 %v1245_v1 }
  0xf7   : > { %1131 = vmatprep.mubr.msk.f32.mxu0 %vm1246_vm0, %v1245_v1 }
 0x1b2   : > { %v505_v35 = vpop.f32.mrf.mxu1 }
 0x1b3   : > { %v510_v36 = vmul.f32 1.442695, %v505_v35  ;;  %vm509_vm5 = vcmp.gt.f32.partialorder %v505_v35, 0.0 }
 0x1b4   : > { %v1098_v37 = vpop.f32.mrf.mxu1 }
 0x1b5   : > { %1179 = vpow2.f32 %v510_v36 }
 0x1b6   : > { %v671_v38 = vpop.f32.mrf.mxu0 }
 0x1b7   : > { %v676_v46 = vmul.f32 1.442695, %v671_v38  ;;  %vm675_vm6 = vcmp.gt.f32.partialorder %v671_v38, 0.0 }
 0x1b8   : > { %v1116_v39 = vpop.f32.mrf.mxu0 }
 0x1b9   : > { %1181 = vpow2.f32 %v676_v46 }
 0x1c2   : > { %v1180_v40 = vpop.eup %1179 }
 0x1c3   : > { %v1044_v41 = vadd.f32 -1.0, %v1180_v40 }
 0x1c5   : > { %v513_v42 = vmul.f32 1.6732632, %v1044_v41 }
 0x1c6   : > { %v1182_v47 = vpop.eup %1181 }
 0x1c7   : > { %v514_v43 = vsel %vm509_vm5, %v505_v35, %v513_v42  ;;  %v1048_v48 = vadd.f32 -1.0, %v1182_v47 }
 0x1c8   : > { %v515_v44 = vmul.f32 1.050701, %v514_v43 }
 0x1c9   : > { %v679_v49 = vmul.f32 1.6732632, %v1048_v48 }
 0x1ca   : > { %1122 = vmatmul.mubr.msk.f32.vlgmr.msra.gmra.mxu1 %vm350_vm1, %v515_v44 }
 0x1cb   : > { %1125 = vmatpush3.xpose.msk.msra.mxu1 %vm350_vm1, %v515_v44  ;;  %1126 = vmatprep.mubr.msk.f32.mxu1 %vm1246_vm0, %v1245_v1  ;;  %v680_v50 = vsel %vm675_vm6, %v671_v38, %v679_v49 }
 0x1cc   : > { %v681_v52 = vmul.f32 1.050701, %v680_v50 }
 0x1ce   : > { %1127 = vmatmul.mubr.msk.f32.vlgmr.msra.gmra.mxu1 %vm350_vm1, %v775_v45 }
 0x28a   : > { %v753_v51 = vpop.f32.mrf.mxu1 }
 0x28b   : > { %1130 = vmatpush3.xpose.msk.msra.mxu0 %vm350_vm1, %v753_v51 }
 0x28c   : > { %v1123_v53 = vpop.f32.mrf.mxu1 }
 0x28e   : > { %1132 = vmatmul.mubr.msk.f32.vlgmr.msra.gmra.mxu0 %vm350_vm1, %v681_v52  ;;  %v860_v54 = vpop.f32.mrf.mxu1 }
 0x28f   : > { %v867_v59 = vrot.slane %v860_v54, %v866_v58 }
 0x290   : > { %v1128_v55 = vpop.f32.mrf.mxu1 }
 0x34e   : > { %v940_v60 = vpop.f32.mrf.mxu0 }
 0x34f   : > { %v941_v62 = vadd.f32 %v940_v60, %v867_v59 }
 0x350   : > { %v1133_v63 = vpop.f32.mrf.mxu0 }
 0x351   : > { %v946_v0 = vadd.f32 %v945_v61, %v941_v62 }
 0x353   : > { %948 = vst.msk [vmem:[%s337_s27] sm:$0xff] %vm947_vm7, %v946_v0 }
 0x354   : > { %1196 = shalt.err (!%p1193_p3)
}
 0x355   : > { %s1197_s24 = scalar_lea.hbm %s961_s10, 128  ;;  %s1201_s26 = scalar_lea.hbm %s1485_s9, 256 }
 0x356   : > { %p1198_p4 = scmp.ne.s32.totalorder %s961_s10, %s1197_s24  ;;  %p1202_p9 = scmp.lt.s32.totalorder %s961_s10, %s1485_s9 }
 0x357   : > { %p1203_p10 = scmp.lt.s32.totalorder %s1201_s26, %s1197_s24 }
 0x358   : > { %p1199_p7 = pnand %p1198_p4, %p1339_p5 }
 0x359   : > { %p1204_p11 = por %p1203_p10, %p1202_p9 }
 0x35a   : > { %p1200_p8 = pneg %p1199_p7 }
 0x35c   : > { %p1205_p12 = pnand %p1204_p11, %p1200_p8 }
 0x35e   : > { %1208 = shalt.err (!%p1205_p12)
}
 0x35f   : > { %1134 = dma.vmem_to_hbm [thread:$0]  (%p1339_p5), %s964_s28, 128, %s961_s10, %s950_s15  }
 0x360 PF: > { %p1140_p13 = scmp.ge.s32.totalorder %s1243_s14, 2  ;;  %s975_s30 = sand.u32 1, %s1231_s11  }
 0x361   : > { %s976_s17 = scalar_lea.sflag [#allocation4], %s975_s30 }
 0x362   : > { %p1137_p0 = pnand %p1140_p13, %p1343_p6 }
 0x364   : > { %p1138_p1 = pneg %p1137_p0 }
 0x366   : > { %1226 = dma.done.wait (%p1138_p1), %s976_s17, 128  }
 0x367   : > { %1228 = vsyncadd (%p1138_p1), %s976_s17, 4294967168  ;;  %p20_p2 = scmp.ge.s32.totalorder %s1326_s16, 4   ;;  %s1488_s11 = smov %s1235_s12 }
 0x368   : > { %s1489_s12 = smov %s1239_s13  ;;  %s1490_s13 = smov %s1337_s19 }
 0x369   : > { %s1491_s14 = smov %s1326_s16  ;;  %22 = sbr.rel (!%p20_p2) target bundleno = 5 (0x5), region = 94 }
 0x36e   :  { %981 = vsyncpa [#allocation4], 1 }
 0x36f   :  { %983 = vsyncpa [#allocation4 + $0x1], 1 }

</bundles_post_ra>
